<compile_context>
chip_gen: v7x
topology: tpu7x:2x2x1
jax: 0.10.0
libtpu: 0.0.40
codegen_flags: <defaults>
</compile_context>

<pallas_src>
import jax
import jax.numpy as jnp
from jax import lax
from jax.experimental import pallas as pl
from jax.experimental.pallas import tpu as pltpu

_EPS = 1e-5


def _round_up(x, m):
    return ((x + m - 1) // m) * m


def _largest_aligned_divisor(dim, align, cap):
    """Largest multiple of `align` dividing `dim`, <= cap (assumes dim % align == 0)."""
    cap = max(align, min(int(cap), dim))
    t = cap - (cap % align)
    while t >= align:
        if dim % t == 0:
            return t
        t -= align
    return align


def _vmem_config():
    """(vmem_limit_bytes, per-tile byte target), TPU-generation aware."""
    cap = 128 * 1024 * 1024
    try:
        info = pltpu.get_tpu_info()
        cap = int(getattr(info, "vmem_capacity_bytes", cap))
    except Exception:
        pass
    if cap >= 96 * 1024 * 1024:
        # v5e / v6e: 128 MiB physical VMEM -> big tiles, fewer grid steps.
        return 96 * 1024 * 1024, 16 * 1024 * 1024
    # v7x-class: 64 MiB physical VMEM, very fast HBM. Keep the double-buffered
    # (input + output) working set (~4 x tile bytes) well under the limit.
    limit = min(48 * 1024 * 1024, (cap * 3) // 4)
    return limit, max(2 * 1024 * 1024, limit // 6)


def _select_tiles(nc_p, hw_p, itemsize, align_r, target_bytes):
    """Pick (t_r, t_hw). Prefer full spatial rows (contiguous DMA, single-step
    reduction in pass 1); shrink the row count to fit the per-tile budget while
    leaving >= 2 row blocks for megacore when possible."""
    row_bytes = hw_p * itemsize
    if row_bytes * align_r <= target_bytes:
        t_hw = hw_p
        row_cap = target_bytes // row_bytes
        if nc_p >= 2 * align_r:              # keep >= 2 parallel row blocks (v7x megacore)
            row_cap = min(row_cap, nc_p // 2)
        t_r = _largest_aligned_divisor(nc_p, align_r, row_cap)
    else:
        # Huge spatial extent: one aligned row group per tile, split HW on lanes.
        t_r = align_r
        hw_cap = target_bytes // (t_r * itemsize)
        t_hw = _largest_aligned_divisor(hw_p, 128, hw_cap)
    return t_r, t_hw


def _stats_kernel(x_ref, sum_ref, sq_ref):
    # Grid (row_tiles, hw_tiles); hw (reduction) axis is last / "arbitrary".
    s = pl.program_id(1)

    @pl.when(s == 0)
    def _():
        sum_ref[...] = jnp.zeros_like(sum_ref)
        sq_ref[...] = jnp.zeros_like(sq_ref)

    x = x_ref[...].astype(jnp.float32)
    sum_ref[...] += jnp.sum(x, axis=-1, keepdims=True)
    sq_ref[...] += jnp.sum(x * x, axis=-1, keepdims=True)


def _normalize_kernel(x_ref, scale_ref, shift_ref, o_ref):
    # Pure load-FMA-store stream: out = x * scale + shift (per-(n,c) affine).
    x = x_ref[...].astype(jnp.float32)
    o_ref[...] = (x * scale_ref[...] + shift_ref[...]).astype(o_ref.dtype)


def batch_instance_norm(x, gamma, beta, rho):
    """x: (N, C, H, W); gamma/beta/rho: (1, C, 1, 1)."""
    N, C, H, W = x.shape
    HW = H * W
    NC = N * C
    itemsize = jnp.dtype(x.dtype).itemsize
    align_r = max(8, 32 // itemsize)     # sublane packing: f32 -> 8, bf16 -> 16, int8 -> 32

    vmem_limit, tile_target = _vmem_config()

    hw_p = _round_up(HW, 128)
    nc_p = _round_up(NC, align_r)

    x_r = x.reshape(NC, HW)
    if hw_p != HW or nc_p != NC:
        # Zero padding contributes 0 to both sums; padded rows/cols are sliced off later.
        x_r = jnp.pad(x_r, ((0, nc_p - NC), (0, hw_p - HW)))

    t_r, t_hw = _select_tiles(nc_p, hw_p, itemsize, align_r, tile_target)
    grid = (nc_p // t_r, hw_p // t_hw)

    # ---------------- pass 1: per-(n,c) sum / sum of squares -----------------
    sums, sqs = pl.pallas_call(
        _stats_kernel,
        out_shape=(
            jax.ShapeDtypeStruct((nc_p, 1), jnp.float32),
            jax.ShapeDtypeStruct((nc_p, 1), jnp.float32),
        ),
        grid=grid,
        in_specs=[pl.BlockSpec((t_r, t_hw), lambda i, j: (i, j))],
        out_specs=(
            pl.BlockSpec((t_r, 1), lambda i, j: (i, 0)),
            pl.BlockSpec((t_r, 1), lambda i, j: (i, 0)),
        ),
        compiler_params=pltpu.CompilerParams(
            dimension_semantics=("parallel", "arbitrary"),
            vmem_limit_bytes=vmem_limit,
        ),
        cost_estimate=pl.CostEstimate(
            flops=3 * nc_p * hw_p,
            transcendentals=0,
            bytes_accessed=nc_p * hw_p * itemsize + 2 * nc_p * 4,
        ),
    )(x_r)

    # ------- finalize stats + fuse into per-(n,c) affine (tiny O(N*C)) -------
    inv_hw = 1.0 / float(HW)
    inst_mean = sums[:NC].reshape(N, C) * inv_hw                     # (N, C)
    inst_ex2 = sqs[:NC].reshape(N, C) * inv_hw
    inst_var = jnp.maximum(inst_ex2 - inst_mean * inst_mean, 0.0)

    batch_mean = jnp.mean(inst_mean, axis=0, keepdims=True)          # (1, C)
    batch_ex2 = jnp.mean(inst_ex2, axis=0, keepdims=True)
    batch_var = jnp.maximum(batch_ex2 - batch_mean * batch_mean, 0.0)

    g = gamma.reshape(1, C).astype(jnp.float32)
    b = beta.reshape(1, C).astype(jnp.float32)
    rh = rho.reshape(1, C).astype(jnp.float32)

    inv_bstd = lax.rsqrt(batch_var + _EPS)                           # (1, C)
    inv_istd = lax.rsqrt(inst_var + _EPS)                            # (N, C)

    scale = g * (rh * inv_bstd + (1.0 - rh) * inv_istd)              # (N, C)
    shift = b - g * (rh * batch_mean * inv_bstd
                     + (1.0 - rh) * inst_mean * inv_istd)            # (N, C)

    scale = scale.reshape(NC, 1)
    shift = shift.reshape(NC, 1)
    if nc_p != NC:
        scale = jnp.pad(scale, ((0, nc_p - NC), (0, 0)))
        shift = jnp.pad(shift, ((0, nc_p - NC), (0, 0)))

    # ---------------- pass 2: fused normalize, out = x*scale + shift ---------
    out = pl.pallas_call(
        _normalize_kernel,
        out_shape=jax.ShapeDtypeStruct((nc_p, hw_p), x.dtype),
        grid=grid,
        in_specs=[
            pl.BlockSpec((t_r, t_hw), lambda i, j: (i, j)),
            pl.BlockSpec((t_r, 1), lambda i, j: (i, 0)),
            pl.BlockSpec((t_r, 1), lambda i, j: (i, 0)),
        ],
        out_specs=pl.BlockSpec((t_r, t_hw), lambda i, j: (i, j)),
        compiler_params=pltpu.CompilerParams(
            dimension_semantics=("parallel", "parallel"),
            vmem_limit_bytes=vmem_limit,
        ),
        cost_estimate=pl.CostEstimate(
            flops=2 * nc_p * hw_p,
            transcendentals=0,
            bytes_accessed=2 * nc_p * hw_p * itemsize,
        ),
    )(x_r, scale, shift)

    if nc_p != NC or hw_p != HW:
        out = out[:NC, :HW]
    return out.reshape(N, C, H, W)


def _reference(x, gamma, beta, rho):
    x = x.astype(jnp.float32)
    im = jnp.mean(x, axis=(2, 3), keepdims=True)
    iv = jnp.mean((x - im) ** 2, axis=(2, 3), keepdims=True)
    bm = jnp.mean(x, axis=(0, 2, 3), keepdims=True)
    bv = jnp.mean((x - bm) ** 2, axis=(0, 2, 3), keepdims=True)
    h_bn = (x - bm) / jnp.sqrt(bv + _EPS)
    h_in = (x - im) / jnp.sqrt(iv + _EPS)
    h = rho * h_bn + (1.0 - rho) * h_in
    return h * gamma + beta


if __name__ == "__main__":
    key = jax.random.PRNGKey(0)
    k_x, k_g, k_b, k_r, k_x2 = jax.random.split(key, 5)

    # Case 1: module shapes, parameters exactly as in __init__ (deterministic).
    N, C, H, W = 2, 4, 16, 16
    x = jax.random.normal(k_x, (N, C, H, W), dtype=jnp.float32)
    gamma = jnp.ones((1, C, 1, 1), dtype=jnp.float32)
    beta = jnp.zeros((1, C, 1, 1), dtype=jnp.float32)
    rho = jnp.ones((1, C, 1, 1), dtype=jnp.float32)

    out = jax.block_until_ready(batch_instance_norm(x, gamma, beta, rho))
    ref = _reference(x, gamma, beta, rho)
    assert out.shape == (N, C, H, W)
    assert jnp.allclose(out, ref, atol=1e-5, rtol=1e-5), "mismatch (default params)"

    # Case 2: non-trivial params exercise both norm paths and the affine.
    gamma2 = jax.random.normal(k_g, (1, C, 1, 1), dtype=jnp.float32)
    beta2 = jax.random.normal(k_b, (1, C, 1, 1), dtype=jnp.float32)
    rho2 = jax.random.uniform(k_r, (1, C, 1, 1), dtype=jnp.float32)

    out2 = jax.block_until_ready(batch_instance_norm(x, gamma2, beta2, rho2))
    ref2 = _reference(x, gamma2, beta2, rho2)
    assert jnp.allclose(out2, ref2, atol=1e-5, rtol=1e-5), "mismatch (random params)"

    # Case 3: non-(8,128)-aligned shapes exercise the zero-padding path.
    N3, C3, H3, W3 = 3, 5, 9, 7
    x3 = jax.random.normal(k_x2, (N3, C3, H3, W3), dtype=jnp.float32)
    gamma3 = jnp.full((1, C3, 1, 1), 0.5, dtype=jnp.float32)
    beta3 = jnp.full((1, C3, 1, 1), 0.25, dtype=jnp.float32)
    rho3 = jnp.full((1, C3, 1, 1), 0.3, dtype=jnp.float32)

    out3 = jax.block_until_ready(batch_instance_norm(x3, gamma3, beta3, rho3))
    ref3 = _reference(x3, gamma3, beta3, rho3)
    assert out3.shape == (N3, C3, H3, W3)
    assert jnp.allclose(out3, ref3, atol=1e-5, rtol=1e-5), "mismatch (padded path)"

    print("KERNEL_OK")
</pallas_src>

<mosaic_0001>
module attributes {stable_mosaic.version = 11 : i64} {
  func.func @_stats_kernel(%arg0: i32, %arg1: i32, %arg2: memref<8x256xf32, #tpu.memory_space<vmem>>, %arg3: memref<8x1xf32, #tpu.memory_space<vmem>>, %arg4: memref<8x1xf32, #tpu.memory_space<vmem>>) attributes {dimension_semantics = [#tpu.dimension_semantics<parallel>, #tpu.dimension_semantics<arbitrary>], iteration_bounds = array<i64: 1, 1>, scalar_prefetch = 0 : i64, scratch_operands = 0 : i64, tpu.core_type = #tpu.core_type<tc>, window_params = [{transform_indices = @transform_0, window_bounds = array<i64: 8, 256>}, {transform_indices = @transform_1, window_bounds = array<i64: 8, 1>}, {transform_indices = @transform_2, window_bounds = array<i64: 8, 1>}]} {
    %c0_i32 = arith.constant 0 : i32
    %0 = arith.cmpi eq, %arg1, %c0_i32 : i32
    %1 = arith.extui %0 : i1 to i32
    %c0_i32_0 = arith.constant 0 : i32
    %2 = arith.cmpi ne, %1, %c0_i32_0 : i32
    scf.if %2 {
      %cst_11 = arith.constant 0.000000e+00 : f32
      %15 = vector.broadcast %cst_11 : f32 to vector<8x1xf32>
      %c0_12 = arith.constant 0 : index
      %c0_13 = arith.constant 0 : index
      %16 = vector.load %arg3[%c0_12, %c0_13] : memref<8x1xf32, #tpu.memory_space<vmem>>, vector<8x1xf32>
      tpu.vector_store %arg3[%c0_12, %c0_13], %15 {strides = array<i32>} : memref<8x1xf32, #tpu.memory_space<vmem>>, vector<8x1xf32>,
      %cst_14 = arith.constant 0.000000e+00 : f32
      %17 = vector.broadcast %cst_14 : f32 to vector<8x1xf32>
      %c0_15 = arith.constant 0 : index
      %c0_16 = arith.constant 0 : index
      %18 = vector.load %arg4[%c0_15, %c0_16] : memref<8x1xf32, #tpu.memory_space<vmem>>, vector<8x1xf32>
      tpu.vector_store %arg4[%c0_15, %c0_16], %17 {strides = array<i32>} : memref<8x1xf32, #tpu.memory_space<vmem>>, vector<8x1xf32>,
    } else {
    }
    %c0 = arith.constant 0 : index
    %c0_1 = arith.constant 0 : index
    %3 = vector.load %arg2[%c0, %c0_1] : memref<8x256xf32, #tpu.memory_space<vmem>>, vector<8x256xf32>
    %c0_2 = arith.constant 0 : index
    %c0_3 = arith.constant 0 : index
    %4 = vector.load %arg3[%c0_2, %c0_3] : memref<8x1xf32, #tpu.memory_space<vmem>>, vector<8x1xf32>
    %cst = arith.constant dense<0.000000e+00> : vector<8xf32>
    %5 = vector.multi_reduction <add>, %3, %cst [1] : vector<8x256xf32> to vector<8xf32>
    %6 = vector.shape_cast %5 : vector<8xf32> to vector<8x1xf32>
    %7 = arith.addf %4, %6 : vector<8x1xf32>
    %c0_4 = arith.constant 0 : index
    %c0_5 = arith.constant 0 : index
    %8 = vector.load %arg3[%c0_4, %c0_5] : memref<8x1xf32, #tpu.memory_space<vmem>>, vector<8x1xf32>
    tpu.vector_store %arg3[%c0_4, %c0_5], %7 {strides = array<i32>} : memref<8x1xf32, #tpu.memory_space<vmem>>, vector<8x1xf32>,
    %c0_6 = arith.constant 0 : index
    %c0_7 = arith.constant 0 : index
    %9 = vector.load %arg4[%c0_6, %c0_7] : memref<8x1xf32, #tpu.memory_space<vmem>>, vector<8x1xf32>
    %10 = arith.mulf %3, %3 : vector<8x256xf32>
    %cst_8 = arith.constant dense<0.000000e+00> : vector<8xf32>
    %11 = vector.multi_reduction <add>, %10, %cst_8 [1] : vector<8x256xf32> to vector<8xf32>
    %12 = vector.shape_cast %11 : vector<8xf32> to vector<8x1xf32>
    %13 = arith.addf %9, %12 : vector<8x1xf32>
    %c0_9 = arith.constant 0 : index
    %c0_10 = arith.constant 0 : index
    %14 = vector.load %arg4[%c0_9, %c0_10] : memref<8x1xf32, #tpu.memory_space<vmem>>, vector<8x1xf32>
    tpu.vector_store %arg4[%c0_9, %c0_10], %13 {strides = array<i32>} : memref<8x1xf32, #tpu.memory_space<vmem>>, vector<8x1xf32>,
    return
  }
  func.func @transform_0(%arg0: i32, %arg1: i32) -> (i32, i32) {
    %c0_i32 = arith.constant 0 : i32
    return %arg0, %arg1 : i32, i32
  }
  func.func @transform_1(%arg0: i32, %arg1: i32) -> (i32, i32) {
    %c0_i32 = arith.constant 0 : i32
    %c0_i32_0 = arith.constant 0 : i32
    return %arg0, %c0_i32 : i32, i32
  }
  func.func @transform_2(%arg0: i32, %arg1: i32) -> (i32, i32) {
    %c0_i32 = arith.constant 0 : i32
    %c0_i32_0 = arith.constant 0 : i32
    return %arg0, %c0_i32 : i32, i32
  }
}

</mosaic_0001>

<bundles_post_ra>
// kernel: tpu_custom_call.1
= control target key start
LH: loop header
LB: loop body
LE: loop exit
PB: predicated region body
PF: predicated region fallthrough
CT: control target
= control target key end

     0   :  { %8 = vsyncpa [#allocation3], 0  ;;  %s212_s0 = inlined_call_operand.hbm [shape: f32[8,256], index: 0, kind: input, shape index: {}]   ;;  %s213_s1 = inlined_call_operand.hbm [shape: f32[8,1], index: 1, kind: output, shape index: {0}]   ;;  %s214_s2 = inlined_call_operand.hbm [shape: f32[8,1], index: 2, kind: output, shape index: {1}]  }
   0x1   :  { %9 = vsyncpa [#allocation4], 0 }
   0x2   :  { %10 = vsyncpa [#allocation7], 0  ;;  %s153_s9 = smov [#allocation2]   ;;  %s81_s13 = scalar_lea.hbm %s212_s0, 256 }
   0x3   :  { %s17_s10 = sshll.u32 %s153_s9, 4  ;;  %p82_p0 = scmp.ne.s32.totalorder %s212_s0, %s81_s13  ;;  %s18_s10 = int_to_ptr.vmem [resolvable:$true] %s17_s10 }
   0x4   :  { %p85_p1 = scmp.lt.u32.totalorder %s81_s13, %s212_s0 }
   0x6   :  { %p87_p2 = pnand %p85_p1, %p82_p0 }
   0x8   :  { %90 = shalt.err (!%p87_p2)
}
   0x9   :  { %s91_s18 = scalar_lea.vmem %s18_s10, 256  ;;  %p96_p4 = scmp.lt.s32.totalorder %s18_s10, %s18_s10 }
   0xa   :  { %p92_p3 = scmp.ne.s32.totalorder %s18_s10, %s91_s18  ;;  %p97_p5 = scmp.lt.s32.totalorder %s91_s18, %s91_s18 }
   0xc   :  { %p98_p6 = por %p97_p5, %p96_p4 }
   0xe   :  { %p99_p7 = pnand %p98_p6, %p92_p3 }
  0x10   :  { %102 = shalt.err (!%p99_p7)
}
  0x11   :  { %20 = dma.hbm_to_vmem [thread:$0]  %s212_s0, 256, %s18_s10, [#allocation3]  }
  0x12   :  { %147 = dma.done.wait [#allocation3], 256  }
  0x13   :  { %148 = vsyncadd [#allocation3], 4294967040  ;;  %vm28_vm0 = vcmask 7168   ;;  %v154_v0 = vmov 0.0   ;;  %v31_v1 = vld [vmem:[#allocation2] sm:$0xff]  ;;  %v32_v2 = vld [vmem:[#allocation2 + $0x8] sm:$0xff] }
  0x14   :  { %29 = vst.msk [vmem:[#allocation5] sm:$0xff] %vm28_vm0, %v154_v0  ;;  %30 = vst.msk [vmem:[#allocation6] sm:$0xff] %vm28_vm0, %v154_v0  ;;  %v34_v3 = vadd.f32 %v32_v2, %v31_v1  ;;  %v41_v4 = vmul.f32 %v31_v1, %v31_v1  ;;  %v42_v5 = vmul.f32 %v32_v2, %v32_v2  ;;  %s155_s21 = smov [#allocation5]   ;;  %s156_s0 = smov [#allocation6]  }
  0x15   :  { %s54_s22 = sshll.u32 %s155_s21, 4  ;;  %s64_s23 = sshll.u32 %s156_s0, 4  ;;  %s55_s22 = int_to_ptr.vmem [resolvable:$true] %s54_s22  ;;  %s65_s23 = int_to_ptr.vmem [resolvable:$true] %s64_s23 }
  0x16   :  { %35 = vadd.xlane.f32.xlu0 %v34_v3  ;;  %v43_v6 = vadd.f32 %v42_v5, %v41_v4  ;;  %s103_s24 = scalar_lea.vmem %s55_s22, 128  ;;  %p108_p9 = scmp.lt.s32.totalorder %s55_s22, %s55_s22 }
  0x17   :  { %p104_p8 = scmp.ne.s32.totalorder %s55_s22, %s103_s24  ;;  %p109_p10 = scmp.lt.s32.totalorder %s103_s24, %s103_s24 }
  0x19   :  { %p110_p11 = por %p109_p10, %p108_p9 }
  0x1a   :  { %44 = vadd.xlane.f32.xlu0 %v43_v6 }
  0x1b   :  { %v33_v7 = vld [vmem:[#allocation5] sm:$0xff]  ;;  %v40_v10 = vld [vmem:[#allocation6] sm:$0xff]  ;;  %p111_p12 = pnand %p110_p11, %p104_p8 }
  0xa3   :  { %v36_v8 = vpop.xlane.xlu0 %35 }
  0xa4   :  { %v37_v9 = vadd.f32 %v36_v8, %v33_v7 }
  0xa6   :  { %39 = vst.msk [vmem:[#allocation5] sm:$0xff] %vm28_vm0, %v37_v9 }
  0xa7   :  { %v45_v11 = vpop.xlane.xlu0 %44 }
  0xa8   :  { %114 = shalt.err (!%p111_p12)
}
  0xa9   :  { %s115_s27 = scalar_lea.hbm %s213_s1, 128 }
  0xaa   :  { %p116_p13 = scmp.ne.s32.totalorder %s213_s1, %s115_s27  ;;  %p119_p0 = scmp.lt.u32.totalorder %s115_s27, %s213_s1 }
  0xac   :  { %p121_p1 = pnand %p119_p0, %p116_p13 }
  0xae   :  { %124 = shalt.err (!%p121_p1)
}
  0xaf   :  { %57 = dma.vmem_to_hbm [thread:$0]  %s55_s22, 128, %s213_s1, [#allocation4]   ;;  %v46_v12 = vadd.f32 %v45_v11, %v40_v10 }
  0xb0   :  { %s125_s6 = scalar_lea.vmem %s65_s23, 128  ;;  %p130_p3 = scmp.lt.s32.totalorder %s65_s23, %s65_s23 }
  0xb1   :  { %47 = vst.msk [vmem:[#allocation6] sm:$0xff] %vm28_vm0, %v46_v12  ;;  %p126_p2 = scmp.ne.s32.totalorder %s65_s23, %s125_s6  ;;  %p131_p4 = scmp.lt.s32.totalorder %s125_s6, %s125_s6 }
  0xb3   :  { %p132_p5 = por %p131_p4, %p130_p3 }
  0xb5   :  { %p133_p6 = pnand %p132_p5, %p126_p2 }
  0xb7   :  { %136 = shalt.err (!%p133_p6)
}
  0xb8   :  { %s137_s9 = scalar_lea.hbm %s214_s2, 128 }
  0xb9   :  { %p138_p7 = scmp.ne.s32.totalorder %s214_s2, %s137_s9  ;;  %p141_p8 = scmp.lt.u32.totalorder %s137_s9, %s214_s2 }
  0xbb   :  { %p143_p9 = pnand %p141_p8, %p138_p7 }
  0xbd   :  { %146 = shalt.err (!%p143_p9)
}
  0xbe   :  { %67 = dma.vmem_to_hbm [thread:$0]  %s65_s23, 128, %s214_s2, [#allocation7]  }
  0xbf   :  { %149 = dma.done.wait [#allocation4], 128  }
  0xc0   :  { %150 = vsyncadd [#allocation4], 4294967168 }
  0xc1   :  { %151 = dma.done.wait [#allocation7], 128  }
  0xc2   :  { %152 = vsyncadd [#allocation7], 4294967168 }
  0xc3   :  { %74 = vsyncpa [#allocation3], 1 }
  0xc4   :  { %75 = vsyncpa [#allocation4], 1 }
  0xc5   :  { %76 = vsyncpa [#allocation7], 1 }

</bundles_post_ra>
